<compile_context>
chip_gen: v7x
topology: tpu7x:2x2x1
jax: 0.10.0
libtpu: 0.0.40
codegen_flags: <defaults>
</compile_context>

<pallas_src>
import functools

import jax
import jax.numpy as jnp
from jax.experimental import pallas as pl
from jax.experimental.pallas import tpu as pltpu


def _round_up(x, m):
    return (x + m - 1) // m * m


def _num_tensorcores_per_device():
    """2 for fused/multi-core chips (v4, v5p, v7x), else 1. Heuristic, safe default."""
    try:
        kind = jax.devices()[0].device_kind.lower()
    except Exception:
        return 1
    return 2 if ("v4" in kind or "v5p" in kind or "v7" in kind) else 1


# ---------------------------------------------------------------------------
# Kernel
# ---------------------------------------------------------------------------
def actor_kernel(x_ref, w1_ref, b1_ref, w2_ref, b2_ref, w3_ref, b3_ref,
                 o_ref, *, max_action):
    """Fused 3-layer MLP on one batch tile: (Linear+ReLU) x2, Linear+Tanh, scale."""
    # f32 -> bf16 cast in-kernel (state is streamed from HBM as f32 once).
    x = x_ref[...].astype(w1_ref.dtype)  # (TB, state_dim) bf16

    # Layer 1: Linear (bf16 MXU, f32 accumulate) + ReLU (f32 VPU)
    h = jnp.dot(x, w1_ref[...], preferred_element_type=jnp.float32) + b1_ref[...]
    h = jnp.maximum(h, 0.0)

    # Layer 2: Linear + ReLU (cast back to bf16 only for the matmul operand)
    h = jnp.dot(h.astype(w2_ref.dtype), w2_ref[...],
                preferred_element_type=jnp.float32) + b2_ref[...]
    h = jnp.maximum(h, 0.0)

    # Layer 3: Linear + Tanh (EUP), scale by max_action. Output last dim is the
    # true action_dim (full-dim block) -> only action_dim columns hit HBM.
    h = jnp.dot(h.astype(w3_ref.dtype), w3_ref[...],
                preferred_element_type=jnp.float32) + b3_ref[...]
    o_ref[...] = (max_action * jnp.tanh(h)).astype(o_ref.dtype)


# ---------------------------------------------------------------------------
# One-time parameter preparation (hoisted out of the per-call path)
# ---------------------------------------------------------------------------
def prepare_actor_params(params, *, compute_dtype=jnp.bfloat16, hidden_multiple=128):
    """Cast weights to bf16 and zero-pad hidden dims to an MXU-friendly multiple.

    Call ONCE per parameter update and reuse the result for every forward.
    (128 is safe on all generations; use 256 to exactly match the v6e/v7x MXU.)
    Zero padding is exact: padded hidden units produce ReLU(0)=0 and multiply
    zero rows of the next weight, contributing exactly nothing.
    """
    w1, b1 = params["w1"], params["b1"]
    w2, b2 = params["w2"], params["b2"]
    w3, b3 = params["w3"], params["b3"]

    h0 = w1.shape[1]
    h1 = w2.shape[1]
    action_dim = w3.shape[1]
    h0p = _round_up(h0, hidden_multiple)
    h1p = _round_up(h1, hidden_multiple)

    if h0p != h0:
        w1 = jnp.pad(w1, ((0, 0), (0, h0p - h0)))
        b1 = jnp.pad(b1, ((0, 0), (0, h0p - h0)))
        w2 = jnp.pad(w2, ((0, h0p - h0), (0, 0)))
    if h1p != h1:
        w2 = jnp.pad(w2, ((0, 0), (0, h1p - h1)))
        b2 = jnp.pad(b2, ((0, 0), (0, h1p - h1)))
        w3 = jnp.pad(w3, ((0, h1p - h1), (0, 0)))

    return {
        "w1": w1.astype(compute_dtype), "b1": b1.astype(jnp.float32),
        "w2": w2.astype(compute_dtype), "b2": b2.astype(jnp.float32),
        "w3": w3.astype(compute_dtype), "b3": b3.astype(jnp.float32),
        "action_dim": action_dim,
    }


# ---------------------------------------------------------------------------
# Forward wrapper
# ---------------------------------------------------------------------------
def actor_forward(state, prepped, max_action, *, tile_b=1024):
    """state: (B, state_dim) f32. prepped: output of prepare_actor_params.

    Returns (B, action_dim) f32 actions in [-max_action, max_action].
    """
    w1, b1 = prepped["w1"], prepped["b1"]
    w2, b2 = prepped["w2"], prepped["b2"]
    w3, b3 = prepped["w3"], prepped["b3"]
    action_dim = prepped["action_dim"]

    B, state_dim = state.shape
    h0p = w1.shape[1]
    h1p = w2.shape[1]

    # --- batch tiling: near-minimal padding, >=2 grid steps on 2-TC devices ---
    n_cores = _num_tensorcores_per_device()
    n = pl.cdiv(B, tile_b)
    if n_cores > 1 and n < n_cores and B >= n_cores * 8:
        n = n_cores                      # let "parallel" shard across TensorCores
    tb = _round_up(pl.cdiv(B, n), 8)     # sublane-aligned tile, <= ~tile_b
    b_pad = n * tb                       # at most ~8 wasted rows per tile
    if b_pad != B:
        state = jnp.pad(state, ((0, b_pad - B), (0, 0)))
    grid = (n,)

    # --- VMEM budget estimate (double-buffered inputs/outputs + activations) ---
    w_bytes = (state_dim * h0p + h0p * h1p + h1p * action_dim) * 2 \
        + (h0p + h1p + action_dim) * 4
    stream_bytes = tb * state_dim * 4 + tb * action_dim * 4
    act_bytes = tb * max(h0p, h1p) * 4 * 4          # f32 activation temporaries
    vmem_est = 2 * w_bytes + 2 * stream_bytes + act_bytes
    vmem_limit = int(min(64 << 20, max(32 << 20, 2 * vmem_est)))

    # --- scheduling hint for XLA around the custom call ---
    flops = 2 * b_pad * (state_dim * h0p + h0p * h1p + h1p * action_dim)
    cost = pl.CostEstimate(
        flops=flops,
        transcendentals=b_pad * action_dim,
        bytes_accessed=b_pad * state_dim * 4 + w_bytes + b_pad * action_dim * 4,
    )

    const = lambda i: (0, 0)  # weights/biases: resident across all batch tiles
    in_specs = [
        pl.BlockSpec((tb, state_dim), lambda i: (i, 0)),   # state tile streams
        pl.BlockSpec((state_dim, h0p), const),             # w1
        pl.BlockSpec((1, h0p), const),                     # b1
        pl.BlockSpec((h0p, h1p), const),                   # w2
        pl.BlockSpec((1, h1p), const),                     # b2
        pl.BlockSpec((h1p, action_dim), const),            # w3
        pl.BlockSpec((1, action_dim), const),              # b3
    ]
    # Output block last dim == full action_dim: no lane padding, no f32 write
    # amplification. TODO(synk): if a profile shows exposed output DMA, try
    # pipeline_mode=pl.Buffered(3) on the state/out specs.
    out_specs = pl.BlockSpec((tb, action_dim), lambda i: (i, 0))

    kernel = functools.partial(actor_kernel, max_action=float(max_action))
    out_padded = pl.pallas_call(
        kernel,
        grid=grid,
        out_shape=jax.ShapeDtypeStruct((b_pad, action_dim), jnp.float32),
        in_specs=in_specs,
        out_specs=out_specs,
        compiler_params=pltpu.CompilerParams(
            dimension_semantics=("parallel",),   # megacore sharding on 2-TC chips
            vmem_limit_bytes=vmem_limit),
        cost_estimate=cost,
    )(state, w1, b1, w2, b2, w3, b3)

    return out_padded[:B]


# ---------------------------------------------------------------------------
# Init + references
# ---------------------------------------------------------------------------
def init_actor_params(key, state_dim, action_dim, hidden_sizes):
    """Deterministic synthetic init matching nn.Linear shapes (stored as (in,out))."""
    h0, h1 = hidden_sizes
    k1, k2, k3, k4, k5, k6 = jax.random.split(key, 6)

    def lin(kw, kb, fan_in, fan_out):
        bound = 1.0 / jnp.sqrt(jnp.float32(fan_in))
        w = jax.random.uniform(kw, (fan_in, fan_out), jnp.float32, -bound, bound)
        b = jax.random.uniform(kb, (1, fan_out), jnp.float32, -bound, bound)
        return w, b

    w1, b1 = lin(k1, k2, state_dim, h0)
    w2, b2 = lin(k3, k4, h0, h1)
    w3, b3 = lin(k5, k6, h1, action_dim)
    return {"w1": w1, "b1": b1, "w2": w2, "b2": b2, "w3": w3, "b3": b3}


def actor_reference_f32(state, params, max_action):
    """Pure-JAX f32 reference (matches the PyTorch module bit-for-intent)."""
    h = jnp.maximum(state @ params["w1"] + params["b1"], 0.0)
    h = jnp.maximum(h @ params["w2"] + params["b2"], 0.0)
    return max_action * jnp.tanh(h @ params["w3"] + params["b3"])


def actor_reference_bf16(state, params, max_action):
    """Reference with the same bf16-matmul / f32-accumulate path as the kernel."""
    c = jnp.bfloat16
    h = jnp.dot(state.astype(c), params["w1"].astype(c),
                preferred_element_type=jnp.float32) + params["b1"]
    h = jnp.maximum(h, 0.0)
    h = jnp.dot(h.astype(c), params["w2"].astype(c),
                preferred_element_type=jnp.float32) + params["b2"]
    h = jnp.maximum(h, 0.0)
    h = jnp.dot(h.astype(c), params["w3"].astype(c),
                preferred_element_type=jnp.float32) + params["b3"]
    return max_action * jnp.tanh(h)


if __name__ == "__main__":
    # Small shapes consistent with the module's forward: state is (B, state_dim).
    batch = 2
    state_dim = 16
    action_dim = 8
    hidden_sizes = (32, 32)
    max_action = 2.0

    key = jax.random.PRNGKey(0)
    k_params, k_state, k_state2 = jax.random.split(key, 3)

    params = init_actor_params(k_params, state_dim, action_dim, hidden_sizes)
    prepped = prepare_actor_params(params)          # one-time prep, reused below
    state = jax.random.normal(k_state, (batch, state_dim), jnp.float32)

    out = actor_forward(state, prepped, max_action)
    out = jax.block_until_ready(out)
    assert out.shape == (batch, action_dim)

    # Tight check vs a reference using the identical bf16-matmul path
    # (zero padding of the hidden dims is mathematically exact).
    ref_matched = actor_reference_bf16(state, params, max_action)
    assert jnp.allclose(out, ref_matched, atol=1e-3, rtol=1e-3), \
        "mismatch vs bf16-matched reference"

    # Looser sanity check vs the pure-f32 PyTorch-equivalent reference.
    ref_f32 = actor_reference_f32(state, params, max_action)
    assert jnp.allclose(out, ref_f32, atol=5e-2, rtol=5e-2), \
        "mismatch vs f32 reference"

    # Exercise the awkward-batch padding path (B not a multiple of 8).
    state2 = jax.random.normal(k_state2, (41, state_dim), jnp.float32)
    out2 = jax.block_until_ready(actor_forward(state2, prepped, max_action))
    ref2 = actor_reference_bf16(state2, params, max_action)
    assert out2.shape == (41, action_dim)
    assert jnp.allclose(out2, ref2, atol=1e-3, rtol=1e-3), \
        "mismatch on padded batch"

    print("KERNEL_OK")
</pallas_src>

<mosaic_0001>
module attributes {stable_mosaic.version = 11 : i64} {
  func.func @actor_kernel(%arg0: i32, %arg1: memref<8x16xf32, #tpu.memory_space<vmem>>, %arg2: memref<16x128xbf16, #tpu.memory_space<vmem>>, %arg3: memref<1x128xf32, #tpu.memory_space<vmem>>, %arg4: memref<128x128xbf16, #tpu.memory_space<vmem>>, %arg5: memref<1x128xf32, #tpu.memory_space<vmem>>, %arg6: memref<128x8xbf16, #tpu.memory_space<vmem>>, %arg7: memref<1x8xf32, #tpu.memory_space<vmem>>, %arg8: memref<8x8xf32, #tpu.memory_space<vmem>>) attributes {dimension_semantics = [#tpu.dimension_semantics<parallel>], iteration_bounds = array<i64: 1>, scalar_prefetch = 0 : i64, scratch_operands = 0 : i64, tpu.core_type = #tpu.core_type<tc>, window_params = [{transform_indices = @transform_0, window_bounds = array<i64: 8, 16>}, {pipeline_mode = #tpu.pipeline_mode<synchronous>, transform_indices = @transform_1, window_bounds = array<i64: 16, 128>}, {pipeline_mode = #tpu.pipeline_mode<synchronous>, transform_indices = @transform_2, window_bounds = array<i64: 1, 128>}, {pipeline_mode = #tpu.pipeline_mode<synchronous>, transform_indices = @transform_3, window_bounds = array<i64: 128, 128>}, {pipeline_mode = #tpu.pipeline_mode<synchronous>, transform_indices = @transform_4, window_bounds = array<i64: 1, 128>}, {pipeline_mode = #tpu.pipeline_mode<synchronous>, transform_indices = @transform_5, window_bounds = array<i64: 128, 8>}, {pipeline_mode = #tpu.pipeline_mode<synchronous>, transform_indices = @transform_6, window_bounds = array<i64: 1, 8>}, {transform_indices = @transform_7, window_bounds = array<i64: 8, 8>}]} {
    %c0 = arith.constant 0 : index
    %c0_0 = arith.constant 0 : index
    %0 = vector.load %arg1[%c0, %c0_0] : memref<8x16xf32, #tpu.memory_space<vmem>>, vector<8x16xf32>
    %1 = arith.truncf %0 : vector<8x16xf32> to vector<8x16xbf16>
    %c0_1 = arith.constant 0 : index
    %c0_2 = arith.constant 0 : index
    %2 = vector.load %arg2[%c0_1, %c0_2] : memref<16x128xbf16, #tpu.memory_space<vmem>>, vector<16x128xbf16>
    %cst = arith.constant dense<0.000000e+00> : vector<8x128xf32>
    %3 = tpu.matmul %1, %2, %cst {dimension_numbers = #tpu.dot_dimension_numbers<[1], [0], [0], [1], [0, 0, 1, 1], [], []>} : vector<8x16xbf16>, vector<16x128xbf16>, vector<8x128xf32> -> vector<8x128xf32>
    %c0_3 = arith.constant 0 : index
    %c0_4 = arith.constant 0 : index
    %4 = vector.load %arg3[%c0_3, %c0_4] : memref<1x128xf32, #tpu.memory_space<vmem>>, vector<1x128xf32>
    %5 = vector.broadcast %4 : vector<1x128xf32> to vector<8x128xf32>
    %6 = arith.addf %3, %5 : vector<8x128xf32>
    %cst_5 = arith.constant 0.000000e+00 : f32
    %7 = vector.broadcast %cst_5 : f32 to vector<8x128xf32>
    %8 = arith.maximumf %6, %7 : vector<8x128xf32>
    %9 = arith.truncf %8 : vector<8x128xf32> to vector<8x128xbf16>
    %c0_6 = arith.constant 0 : index
    %c0_7 = arith.constant 0 : index
    %10 = vector.load %arg4[%c0_6, %c0_7] : memref<128x128xbf16, #tpu.memory_space<vmem>>, vector<128x128xbf16>
    %cst_8 = arith.constant dense<0.000000e+00> : vector<8x128xf32>
    %11 = tpu.matmul %9, %10, %cst_8 {dimension_numbers = #tpu.dot_dimension_numbers<[1], [0], [0], [1], [0, 0, 1, 1], [], []>} : vector<8x128xbf16>, vector<128x128xbf16>, vector<8x128xf32> -> vector<8x128xf32>
    %c0_9 = arith.constant 0 : index
    %c0_10 = arith.constant 0 : index
    %12 = vector.load %arg5[%c0_9, %c0_10] : memref<1x128xf32, #tpu.memory_space<vmem>>, vector<1x128xf32>
    %13 = vector.broadcast %12 : vector<1x128xf32> to vector<8x128xf32>
    %14 = arith.addf %11, %13 : vector<8x128xf32>
    %cst_11 = arith.constant 0.000000e+00 : f32
    %15 = vector.broadcast %cst_11 : f32 to vector<8x128xf32>
    %16 = arith.maximumf %14, %15 : vector<8x128xf32>
    %17 = arith.truncf %16 : vector<8x128xf32> to vector<8x128xbf16>
    %c0_12 = arith.constant 0 : index
    %c0_13 = arith.constant 0 : index
    %18 = vector.load %arg6[%c0_12, %c0_13] : memref<128x8xbf16, #tpu.memory_space<vmem>>, vector<128x8xbf16>
    %cst_14 = arith.constant dense<0.000000e+00> : vector<8x8xf32>
    %19 = tpu.matmul %17, %18, %cst_14 {dimension_numbers = #tpu.dot_dimension_numbers<[1], [0], [0], [1], [0, 0, 1, 1], [], []>} : vector<8x128xbf16>, vector<128x8xbf16>, vector<8x8xf32> -> vector<8x8xf32>
    %c0_15 = arith.constant 0 : index
    %c0_16 = arith.constant 0 : index
    %20 = vector.load %arg7[%c0_15, %c0_16] : memref<1x8xf32, #tpu.memory_space<vmem>>, vector<1x8xf32>
    %21 = vector.broadcast %20 : vector<1x8xf32> to vector<8x8xf32>
    %22 = arith.addf %19, %21 : vector<8x8xf32>
    %23 = math.tanh %22 : vector<8x8xf32>
    %cst_17 = arith.constant 2.000000e+00 : f32
    %24 = vector.broadcast %cst_17 : f32 to vector<8x8xf32>
    %25 = arith.mulf %24, %23 : vector<8x8xf32>
    %c0_18 = arith.constant 0 : index
    %c0_19 = arith.constant 0 : index
    %26 = vector.load %arg8[%c0_18, %c0_19] : memref<8x8xf32, #tpu.memory_space<vmem>>, vector<8x8xf32>
    tpu.vector_store %arg8[%c0_18, %c0_19], %25 {strides = array<i32>} : memref<8x8xf32, #tpu.memory_space<vmem>>, vector<8x8xf32>,
    return
  }
  func.func @transform_0(%arg0: i32) -> (i32, i32) {
    %c0_i32 = arith.constant 0 : i32
    %c0_i32_0 = arith.constant 0 : i32
    return %arg0, %c0_i32 : i32, i32
  }
  func.func @transform_1(%arg0: i32) -> (i32, i32) {
    %c0_i32 = arith.constant 0 : i32
    %c0_i32_0 = arith.constant 0 : i32
    %c0_i32_1 = arith.constant 0 : i32
    return %c0_i32, %c0_i32_0 : i32, i32
  }
  func.func @transform_2(%arg0: i32) -> (i32, i32) {
    %c0_i32 = arith.constant 0 : i32
    %c0_i32_0 = arith.constant 0 : i32
    %c0_i32_1 = arith.constant 0 : i32
    return %c0_i32, %c0_i32_0 : i32, i32
  }
  func.func @transform_3(%arg0: i32) -> (i32, i32) {
    %c0_i32 = arith.constant 0 : i32
    %c0_i32_0 = arith.constant 0 : i32
    %c0_i32_1 = arith.constant 0 : i32
    return %c0_i32, %c0_i32_0 : i32, i32
  }
  func.func @transform_4(%arg0: i32) -> (i32, i32) {
    %c0_i32 = arith.constant 0 : i32
    %c0_i32_0 = arith.constant 0 : i32
    %c0_i32_1 = arith.constant 0 : i32
    return %c0_i32, %c0_i32_0 : i32, i32
  }
  func.func @transform_5(%arg0: i32) -> (i32, i32) {
    %c0_i32 = arith.constant 0 : i32
    %c0_i32_0 = arith.constant 0 : i32
    %c0_i32_1 = arith.constant 0 : i32
    return %c0_i32, %c0_i32_0 : i32, i32
  }
  func.func @transform_6(%arg0: i32) -> (i32, i32) {
    %c0_i32 = arith.constant 0 : i32
    %c0_i32_0 = arith.constant 0 : i32
    %c0_i32_1 = arith.constant 0 : i32
    return %c0_i32, %c0_i32_0 : i32, i32
  }
  func.func @transform_7(%arg0: i32) -> (i32, i32) {
    %c0_i32 = arith.constant 0 : i32
    %c0_i32_0 = arith.constant 0 : i32
    return %arg0, %c0_i32 : i32, i32
  }
}

</mosaic_0001>

<bundles_post_ra>
// kernel: tpu_custom_call.1
= control target key start
LH: loop header
LB: loop body
LE: loop exit
PB: predicated region body
PF: predicated region fallthrough
CT: control target
= control target key end

     0   :  { %12 = vsyncpa [#allocation3], 0  ;;  %s658_s0 = inlined_call_operand.vmem [shape: f32[8,16], index: 0, kind: input, shape index: {}]   ;;  %s659_s1 = inlined_call_operand.hbm [shape: bf16[16,128], index: 1, kind: input, shape index: {}]   ;;  %s660_s2 = inlined_call_operand.vmem [shape: f32[1,128], index: 2, kind: input, shape index: {}]   ;;  %s661_s3 = inlined_call_operand.vmem [shape: bf16[128,128], index: 3, kind: input, shape index: {}]   ;;  %s662_s4 = inlined_call_operand.vmem [shape: f32[1,128], index: 4, kind: input, shape index: {}]   ;;  %s663_s5 = inlined_call_operand.vmem [shape: bf16[128,8], index: 5, kind: input, shape index: {}]   ;;  %s664_s6 = inlined_call_operand.vmem [shape: f32[1,8], index: 6, kind: input, shape index: {}]   ;;  %s665_s7 = inlined_call_operand.hbm [shape: f32[8,8], index: 7, kind: output, shape index: {}]  }
   0x1   :  { %13 = vsyncpa [#allocation4], 0  ;;  %s508_s24 = smov [#allocation2]   ;;  %s460_s28 = scalar_lea.hbm %s659_s1, 128 }
   0x2   :  { %s21_s25 = sshll.u32 %s508_s24, 4  ;;  %p461_p0 = scmp.ne.s32.totalorder %s659_s1, %s460_s28  ;;  %s22_s25 = int_to_ptr.vmem [resolvable:$true] %s21_s25 }
   0x3   :  { %p464_p1 = scmp.lt.u32.totalorder %s460_s28, %s659_s1 }
   0x5   :  { %p466_p2 = pnand %p464_p1, %p461_p0 }
   0x7   :  { %469 = shalt.err (!%p466_p2)
}
   0x8   :  { %s470_s10 = scalar_lea.vmem %s22_s25, 128  ;;  %p475_p4 = scmp.lt.s32.totalorder %s22_s25, %s22_s25 }
   0x9   :  { %p471_p3 = scmp.ne.s32.totalorder %s22_s25, %s470_s10  ;;  %p476_p5 = scmp.lt.s32.totalorder %s470_s10, %s470_s10 }
   0xb   :  { %p477_p6 = por %p476_p5, %p475_p4 }
   0xd   :  { %p478_p7 = pnand %p477_p6, %p471_p3 }
   0xf   :  { %481 = shalt.err (!%p478_p7)
}
  0x10   :  { %s509_s11 = smov 64   ;;  %s510_s12 = smov 4  }
  0x11   :  { %27 = dma.hbm_to_vmem [thread:$0]  %s659_s1, 128, %s22_s25, [#allocation3], %s509_s11, %s509_s11, %s510_s12  }
  0x12   :  { %504 = dma.done.wait [#allocation3], 128  }
  0x13   :  { %505 = vsyncadd [#allocation3], 4294967168  ;;  %v511_v0 = vmov 0.0   ;;  %vm512_vm0 = vmmov 0   ;;  %v441_v1 = vld [vmem:[#allocation2] sm:$0xff]   ;;  %vm59_vm1 = vcmask 130048  }
  0x14   :  { %389 = vmatprep.subr.bf16.mxu0 %v511_v0  ;;  %391 = vmatprep.mubr.msk.bf16.mxu0 %vm512_vm0, %v511_v0  ;;  %v42_v2 = vld [vmem:[%s658_s0] sm:$0xff]  ;;  %v443_v5 = vld [vmem:[%s661_s3 + $0x8] sm:$0xff]   ;;  %v444_v6 = vld [vmem:[%s661_s3 + $0x10] sm:$0xff]   ;;  %vm331_vm2 = vcmask 64512  }
  0x15   :  { %395 = vmatprep.subr.bf16.mxu1 %v511_v0  ;;  %411 = vmatprep.mubr.msk.bf16.mxu1 %vm512_vm0, %v511_v0  ;;  %v43_v3 = vpack.c.bf16 %v42_v2, %v42_v2  ;;  %v442_v4 = vld [vmem:[%s661_s3] sm:$0xff]   ;;  %v445_v7 = vld [vmem:[%s661_s3 + $0x18] sm:$0xff]   ;;  %v447_v9 = vld [vmem:[%s661_s3 + $0x28] sm:$0xff]  }
  0x16   :  { %390 = vmatpush3.bf16.msra.mxu0 %v441_v1  ;;  %396 = vmatpush3.bf16.msra.mxu1 %v442_v4  ;;  %v446_v8 = vld [vmem:[%s661_s3 + $0x20] sm:$0xff]   ;;  %v448_v10 = vld [vmem:[%s661_s3 + $0x30] sm:$0xff]   ;;  %v449_v11 = vld [vmem:[%s661_s3 + $0x38] sm:$0xff]  }
  0x17   :  { %415 = vmatprep.subr.bf16.mxu0 %v511_v0  ;;  %397 = vmatprep.subr.bf16.mxu1 %v511_v0  ;;  %v450_v12 = vld [vmem:[%s663_s5] sm:$0xff]   ;;  %v451_v13 = vld [vmem:[%s663_s5 + $0x8] sm:$0xff]   ;;  %v452_v14 = vld [vmem:[%s663_s5 + $0x10] sm:$0xff]  }
  0x18   :  { %v453_v15 = vld [vmem:[%s663_s5 + $0x18] sm:$0xff]   ;;  %v454_v16 = vld [vmem:[%s663_s5 + $0x20] sm:$0xff]   ;;  %v455_v17 = vld [vmem:[%s663_s5 + $0x28] sm:$0xff]  }
  0x19   :  { %392 = vmatmul.mubr.msk.bf16.vlgmr.msra.gmra.mrb[0].mxu0 %vm59_vm1, %v43_v3  ;;  %v348_v18 = vld [vmem:[%s660_s2] ss:$0 sm:$0xff]  ;;  %v456_v26 = vld [vmem:[%s663_s5 + $0x30] sm:$0xff]   ;;  %v457_v27 = vld [vmem:[%s663_s5 + $0x38] sm:$0xff]   ;;  %s513_s5 = smov [#allocation5]  }
  0x1a   :  { %431 = vmatprep.mubr.msk.bf16.mxu0 %vm512_vm0, %v511_v0  ;;  %398 = vmatpush3.bf16.msra.mxu1 %v443_v5  ;;  %v351_v28 = vld [vmem:[%s662_s4] ss:$0 sm:$0xff]  ;;  %s339_s4 = sshll.u32 %s513_s5, 4  ;;  %s340_s4 = int_to_ptr.vmem [resolvable:$true] %s339_s4 }
  0x1b   :  { %399 = vmatprep.subr.bf16.mxu1 %v511_v0  ;;  %416 = vmatpush3.bf16.msra.mxu0 %v450_v12  ;;  %v360_v36 = vld [vmem:[%s664_s6] ss:$0 sm:$0xff]  ;;  %s482_s26 = scalar_lea.vmem %s340_s4, 128  ;;  %p487_p9 = scmp.lt.s32.totalorder %s340_s4, %s340_s4 }
  0x1c   :  { %417 = vmatprep.subr.bf16.mxu0 %v511_v0  ;;  %p483_p8 = scmp.ne.s32.totalorder %s340_s4, %s482_s26  ;;  %p488_p10 = scmp.lt.s32.totalorder %s482_s26, %s482_s26 }
  0x1e   :  { %400 = vmatpush3.bf16.msra.mxu1 %v444_v6  ;;  %p489_p11 = por %p488_p10, %p487_p9 }
  0x1f   :  { %401 = vmatprep.subr.bf16.mxu1 %v511_v0  ;;  %418 = vmatpush3.bf16.msra.mxu0 %v451_v13 }
  0x20   :  { %419 = vmatprep.subr.bf16.mxu0 %v511_v0  ;;  %p490_p12 = pnand %p489_p11, %p483_p8 }
  0x22   :  { %402 = vmatpush3.bf16.msra.mxu1 %v445_v7 }
  0x23   :  { %403 = vmatprep.subr.bf16.mxu1 %v511_v0  ;;  %420 = vmatpush3.bf16.msra.mxu0 %v452_v14 }
  0x24   :  { %421 = vmatprep.subr.bf16.mxu0 %v511_v0 }
  0x26   :  { %404 = vmatpush3.bf16.msra.mxu1 %v446_v8 }
  0x27   :  { %405 = vmatprep.subr.bf16.mxu1 %v511_v0  ;;  %422 = vmatpush3.bf16.msra.mxu0 %v453_v15 }
  0x28   :  { %423 = vmatprep.subr.bf16.mxu0 %v511_v0 }
  0x2a   :  { %406 = vmatpush3.bf16.msra.mxu1 %v447_v9 }
  0x2b   :  { %407 = vmatprep.subr.bf16.mxu1 %v511_v0  ;;  %424 = vmatpush3.bf16.msra.mxu0 %v454_v16 }
  0x2c   :  { %425 = vmatprep.subr.bf16.mxu0 %v511_v0 }
  0x2e   :  { %408 = vmatpush3.bf16.msra.mxu1 %v448_v10 }
  0x2f   :  { %409 = vmatprep.subr.bf16.mxu1 %v511_v0  ;;  %426 = vmatpush3.bf16.msra.mxu0 %v455_v17 }
  0x30   :  { %427 = vmatprep.subr.bf16.mxu0 %v511_v0 }
  0x32   :  { %410 = vmatpush3.bf16.msra.mxu1 %v449_v11 }
  0x33   :  { %428 = vmatpush3.bf16.msra.mxu0 %v456_v26 }
  0x34   :  { %429 = vmatprep.subr.bf16.mxu0 %v511_v0 }
  0x37   :  { %430 = vmatpush3.bf16.msra.mxu0 %v457_v27 }
  0xec   :  { %v97_v19 = vpop.f32.mrb[0].mxu0 }
  0xed   :  { %v98_v20 = vadd.f32 %v348_v18, %v97_v19  ;;  %v393_v21 = vpop.f32.mrb[1].mxu0 }
  0xee   :  { %v100_v22 = vpop.f32.mrb[2].mxu0 }
  0xef   :  { %v103_v23 = vmax.f32 %v98_v20, 0.0  ;;  %v394_v24 = vpop.f32.mrb[3].mxu0 }
  0xf1   :  { %v104_v25 = vpack.c.bf16 %v103_v23, %v103_v23 }
  0xf3   :  { %412 = vmatmul.mubr.bf16.vlgmr.msra.gmra.mrb[0].mxu1 %v104_v25 }
 0x1c6   :  { %v210_v29 = vpop.f32.mrb[0].mxu1 }
 0x1c7   :  { %v211_v30 = vadd.f32 %v351_v28, %v210_v29  ;;  %v413_v31 = vpop.f32.mrb[1].mxu1 }
 0x1c8   :  { %v213_v32 = vpop.f32.mrb[2].mxu1 }
 0x1c9   :  { %v216_v33 = vmax.f32 %v211_v30, 0.0  ;;  %v414_v34 = vpop.f32.mrb[3].mxu1 }
 0x1cb   :  { %v217_v35 = vpack.c.bf16 %v216_v33, %v216_v33 }
 0x1cd   :  { %432 = vmatmul.mubr.bf16.vlgmr.msra.gmra.mrb[4].mxu0 %v217_v35 }
 0x2a0   :  { %v323_v37 = vpop.f32.mrb[4].mxu0 }
 0x2a1   :  { %v324_v38 = vadd.f32 %v360_v36, %v323_v37  ;;  %v433_v39 = vpop.f32.mrb[5].mxu0 }
 0x2a2   :  { %v326_v40 = vpop.f32.mrb[6].mxu0 }
 0x2a3   :  { %458 = vtanh.f32 %v324_v38  ;;  %v434_v41 = vpop.f32.mrb[7].mxu0 }
 0x2ad   :  { %v459_v42 = vpop.eup %458 }
 0x2ae   :  { %v330_v43 = vmul.f32 2.0, %v459_v42 }
 0x2b0   :  { %332 = vst.msk [vmem:[#allocation5] sm:$0xff] %vm331_vm2, %v330_v43 }
 0x2b1   :  { %493 = shalt.err (!%p490_p12)
}
 0x2b2   :  { %s494_s28 = scalar_lea.hbm %s665_s7, 128 }
 0x2b3   :  { %p495_p13 = scmp.ne.s32.totalorder %s665_s7, %s494_s28  ;;  %p498_p0 = scmp.lt.u32.totalorder %s494_s28, %s665_s7 }
 0x2b5   :  { %p500_p1 = pnand %p498_p0, %p495_p13 }
 0x2b7   :  { %503 = shalt.err (!%p500_p1)
}
 0x2b8   :  { %342 = dma.vmem_to_hbm [thread:$0]  %s340_s4, 128, %s665_s7, [#allocation4]  }
 0x2b9   :  { %506 = dma.done.wait [#allocation4], 128  }
 0x2ba   :  { %507 = vsyncadd [#allocation4], 4294967168 }
 0x2bb   :  { %346 = vsyncpa [#allocation3], 1 }
 0x2bc   :  { %347 = vsyncpa [#allocation4], 1 }

</bundles_post_ra>
